<compile_context>
chip_gen: v6e
topology: v6e:2x2x1
jax: 0.10.0
libtpu: 0.0.40
codegen_flags: <defaults>
</compile_context>

<pallas_src>
import jax
import jax.numpy as jnp
from jax.experimental import pallas as pl
from jax.experimental.pallas import tpu as pltpu


def _ffn_kernel(x_ref, w1_ref, b1_ref, w2_ref, b2_ref, o_ref, acc_ref):
    k = pl.program_id(1)

    @pl.when(k == 0)
    def _init():
        acc_ref[...] = jnp.zeros_like(acc_ref)

    # First linear, one hidden chunk: [TM, D] @ [D, HK] -> f32
    h = jnp.dot(x_ref[...], w1_ref[...], preferred_element_type=jnp.float32)
    h = jnp.maximum(h + b1_ref[...], 0.0)            # bias + ReLU in f32
    # (dropout == identity in eval mode)

    # Second linear, partial contraction: [TM, HK] @ [HK, D] accumulated in f32
    acc_ref[...] += jnp.dot(h.astype(w2_ref.dtype), w2_ref[...],
                            preferred_element_type=jnp.float32)

    @pl.when(k == pl.num_programs(1) - 1)
    def _finalize():
        o_ref[...] = (acc_ref[...] + b2_ref[...]).astype(o_ref.dtype)


def _round_up(x, m):
    return -(-x // m) * m


def _pick_hidden_chunk(h_p, target=1024):
    """Largest chunk <= target that divides h_p; prefer multiples of 256
    (v6e/v7x MXU width), fall back to multiples of 128."""
    for align in (256, 128):
        best = 0
        c = align
        while c <= min(h_p, target):
            if h_p % c == 0:
                best = c
            c += align
        if best:
            return best
    return h_p


def feedback_net_forward(x, w1, b1, w2, b2, *, tm_max=256, hk_target=1024):
    """Fused FFN forward.

    x : [tokens, d_model]           float32 (or bf16)
    w1: [d_model, 10*d_model]       (transposed vs. nn.Linear.weight)
    b1: [1, 10*d_model]
    w2: [10*d_model, d_model]
    b2: [1, d_model]
    returns [tokens, d_model] in x.dtype
    """
    tokens, d_model = x.shape
    hidden = w1.shape[1]
    out_dtype = x.dtype

    # Lane-dense feature dims: pad to multiples of 128 (zeros are inert:
    # relu(0 + 0) = 0 and zero weight rows/cols contribute nothing).
    d_p = _round_up(d_model, 128)
    h_p = _round_up(hidden, 128)

    # Token tile: 256 (amortizes grid-step overhead), or the whole (8-rounded)
    # token count when the problem is small.
    tm = tm_max if tokens >= tm_max else _round_up(tokens, 8)
    t_p = _round_up(tokens, tm)

    hk = _pick_hidden_chunk(h_p, hk_target)

    # bf16 matmul operands (f32 accumulation in-kernel); biases stay f32.
    x_p = jnp.zeros((t_p, d_p), jnp.bfloat16).at[:tokens, :d_model].set(
        x.astype(jnp.bfloat16))
    w1_p = jnp.zeros((d_p, h_p), jnp.bfloat16).at[:d_model, :hidden].set(
        w1.astype(jnp.bfloat16))
    b1_p = jnp.zeros((1, h_p), jnp.float32).at[:, :hidden].set(
        b1.astype(jnp.float32))
    w2_p = jnp.zeros((h_p, d_p), jnp.bfloat16).at[:hidden, :d_model].set(
        w2.astype(jnp.bfloat16))
    b2_p = jnp.zeros((1, d_p), jnp.float32).at[:, :d_model].set(
        b2.astype(jnp.float32))

    flops = 4 * t_p * d_p * h_p                      # two matmuls, 2*M*N*K each
    bytes_accessed = (x_p.size * 2 + w1_p.size * 2 + w2_p.size * 2
                      + b1_p.size * 4 + b2_p.size * 4
                      + t_p * d_p * jnp.dtype(out_dtype).itemsize)

    y_p = pl.pallas_call(
        _ffn_kernel,
        out_shape=jax.ShapeDtypeStruct((t_p, d_p), out_dtype),
        grid_spec=pltpu.PrefetchScalarGridSpec(
            num_scalar_prefetch=0,
            grid=(t_p // tm, h_p // hk),
            in_specs=[
                pl.BlockSpec((tm, d_p), lambda i, k: (i, 0)),   # x tile (resident over k)
                pl.BlockSpec((d_p, hk), lambda i, k: (0, k)),   # w1 chunk
                pl.BlockSpec((1, hk),   lambda i, k: (0, k)),   # b1 chunk
                pl.BlockSpec((hk, d_p), lambda i, k: (k, 0)),   # w2 chunk
                pl.BlockSpec((1, d_p),  lambda i, k: (0, 0)),   # b2
            ],
            out_specs=pl.BlockSpec((tm, d_p), lambda i, k: (i, 0)),
            scratch_shapes=[pltpu.VMEM((tm, d_p), jnp.float32)],
        ),
        compiler_params=pltpu.CompilerParams(
            dimension_semantics=("parallel", "arbitrary"),
            vmem_limit_bytes=48 * 1024 * 1024,       # headroom below v7x 64 MiB
        ),
        cost_estimate=pl.CostEstimate(
            flops=flops, transcendentals=0, bytes_accessed=int(bytes_accessed)),
    )(x_p, w1_p, b1_p, w2_p, b2_p)

    # Slice off token / feature padding.
    return y_p[:tokens, :d_model]


def init_params(key, d_model):
    """Deterministic parameter init matching nn.Linear shapes (stored transposed)."""
    hidden = d_model * 10
    k1, k2, k3, k4 = jax.random.split(key, 4)
    s1 = 1.0 / jnp.sqrt(d_model)
    s2 = 1.0 / jnp.sqrt(hidden)
    w1 = jax.random.uniform(k1, (d_model, hidden), jnp.float32, -s1, s1)
    b1 = jax.random.uniform(k2, (1, hidden), jnp.float32, -s1, s1)
    w2 = jax.random.uniform(k3, (hidden, d_model), jnp.float32, -s2, s2)
    b2 = jax.random.uniform(k4, (1, d_model), jnp.float32, -s2, s2)
    return w1, b1, w2, b2


if __name__ == "__main__":
    # Small but lane-dense demo: d_model = 128 -> hidden = 1280, tokens = 16.
    batch, seq, d_model = 2, 8, 128
    key = jax.random.PRNGKey(0)
    kx, kp = jax.random.split(key)

    x = jax.random.normal(kx, (batch, seq, d_model), jnp.float32)
    w1, b1, w2, b2 = init_params(kp, d_model)

    # Flatten (batch, seq) -> tokens for the kernel; reshape back afterwards.
    x2d = x.reshape(batch * seq, d_model)
    y2d = feedback_net_forward(x2d, w1, b1, w2, b2)
    y = y2d.reshape(batch, seq, d_model)
    jax.block_until_ready(y)

    # Pure-JAX reference mimicking the in-kernel bf16 operand rounding
    # (f32 accumulation), so the comparison tolerance can stay tight.
    xb = x2d.astype(jnp.bfloat16).astype(jnp.float32)
    w1b = w1.astype(jnp.bfloat16).astype(jnp.float32)
    w2b = w2.astype(jnp.bfloat16).astype(jnp.float32)
    h_ref = jnp.maximum(xb @ w1b + b1, 0.0)
    h_ref = h_ref.astype(jnp.bfloat16).astype(jnp.float32)
    ref = (h_ref @ w2b + b2).reshape(batch, seq, d_model)

    assert jnp.allclose(y, ref, atol=1e-2, rtol=1e-2), "mismatch vs reference"
    print("KERNEL_OK")
</pallas_src>

<mosaic_0001>
module attributes {stable_mosaic.version = 11 : i64} {
  func.func @_ffn_kernel(%arg0: i32, %arg1: i32, %arg2: memref<16x128xbf16, #tpu.memory_space<vmem>>, %arg3: memref<128x256xbf16, #tpu.memory_space<vmem>>, %arg4: memref<1x256xf32, #tpu.memory_space<vmem>>, %arg5: memref<256x128xbf16, #tpu.memory_space<vmem>>, %arg6: memref<1x128xf32, #tpu.memory_space<vmem>>, %arg7: memref<16x128xf32, #tpu.memory_space<vmem>>, %arg8: memref<16x128xf32, #tpu.memory_space<vmem>>) attributes {dimension_semantics = [#tpu.dimension_semantics<parallel>, #tpu.dimension_semantics<arbitrary>], iteration_bounds = array<i64: 1, 5>, scalar_prefetch = 0 : i64, scratch_operands = 1 : i64, tpu.core_type = #tpu.core_type<tc>, window_params = [{transform_indices = @transform_0, window_bounds = array<i64: 16, 128>}, {transform_indices = @transform_1, window_bounds = array<i64: 128, 256>}, {transform_indices = @transform_2, window_bounds = array<i64: 1, 256>}, {transform_indices = @transform_3, window_bounds = array<i64: 256, 128>}, {pipeline_mode = #tpu.pipeline_mode<synchronous>, transform_indices = @transform_4, window_bounds = array<i64: 1, 128>}, {transform_indices = @transform_5, window_bounds = array<i64: 16, 128>}]} {
    %c0_i32 = arith.constant 0 : i32
    %0 = arith.cmpi eq, %arg1, %c0_i32 : i32
    %1 = arith.extui %0 : i1 to i32
    %c0_i32_0 = arith.constant 0 : i32
    %2 = arith.cmpi ne, %1, %c0_i32_0 : i32
    scf.if %2 {
      %cst_15 = arith.constant 0.000000e+00 : f32
      %20 = vector.broadcast %cst_15 : f32 to vector<16x128xf32>
      %c0_16 = arith.constant 0 : index
      %c0_17 = arith.constant 0 : index
      %21 = vector.load %arg8[%c0_16, %c0_17] : memref<16x128xf32, #tpu.memory_space<vmem>>, vector<16x128xf32>
      tpu.vector_store %arg8[%c0_16, %c0_17], %20 {strides = array<i32>} : memref<16x128xf32, #tpu.memory_space<vmem>>, vector<16x128xf32>,
    } else {
    }
    %c0 = arith.constant 0 : index
    %c0_1 = arith.constant 0 : index
    %3 = vector.load %arg2[%c0, %c0_1] : memref<16x128xbf16, #tpu.memory_space<vmem>>, vector<16x128xbf16>
    %c0_2 = arith.constant 0 : index
    %c0_3 = arith.constant 0 : index
    %4 = vector.load %arg3[%c0_2, %c0_3] : memref<128x256xbf16, #tpu.memory_space<vmem>>, vector<128x256xbf16>
    %cst = arith.constant dense<0.000000e+00> : vector<16x256xf32>
    %5 = tpu.matmul %3, %4, %cst {dimension_numbers = #tpu.dot_dimension_numbers<[1], [0], [0], [1], [0, 0, 1, 1], [], []>} : vector<16x128xbf16>, vector<128x256xbf16>, vector<16x256xf32> -> vector<16x256xf32>
    %c0_4 = arith.constant 0 : index
    %c0_5 = arith.constant 0 : index
    %6 = vector.load %arg4[%c0_4, %c0_5] : memref<1x256xf32, #tpu.memory_space<vmem>>, vector<1x256xf32>
    %7 = vector.broadcast %6 : vector<1x256xf32> to vector<16x256xf32>
    %8 = arith.addf %5, %7 : vector<16x256xf32>
    %cst_6 = arith.constant 0.000000e+00 : f32
    %9 = vector.broadcast %cst_6 : f32 to vector<16x256xf32>
    %10 = arith.maximumf %8, %9 : vector<16x256xf32>
    %c0_7 = arith.constant 0 : index
    %c0_8 = arith.constant 0 : index
    %11 = vector.load %arg8[%c0_7, %c0_8] : memref<16x128xf32, #tpu.memory_space<vmem>>, vector<16x128xf32>
    %12 = arith.truncf %10 : vector<16x256xf32> to vector<16x256xbf16>
    %c0_9 = arith.constant 0 : index
    %c0_10 = arith.constant 0 : index
    %13 = vector.load %arg5[%c0_9, %c0_10] : memref<256x128xbf16, #tpu.memory_space<vmem>>, vector<256x128xbf16>
    %cst_11 = arith.constant dense<0.000000e+00> : vector<16x128xf32>
    %14 = tpu.matmul %12, %13, %cst_11 {dimension_numbers = #tpu.dot_dimension_numbers<[1], [0], [0], [1], [0, 0, 1, 1], [], []>} : vector<16x256xbf16>, vector<256x128xbf16>, vector<16x128xf32> -> vector<16x128xf32>
    %15 = arith.addf %11, %14 : vector<16x128xf32>
    %c0_12 = arith.constant 0 : index
    %c0_13 = arith.constant 0 : index
    %16 = vector.load %arg8[%c0_12, %c0_13] : memref<16x128xf32, #tpu.memory_space<vmem>>, vector<16x128xf32>
    tpu.vector_store %arg8[%c0_12, %c0_13], %15 {strides = array<i32>} : memref<16x128xf32, #tpu.memory_space<vmem>>, vector<16x128xf32>,
    %c4_i32 = arith.constant 4 : i32
    %17 = arith.cmpi eq, %arg1, %c4_i32 : i32
    %18 = arith.extui %17 : i1 to i32
    %c0_i32_14 = arith.constant 0 : i32
    %19 = arith.cmpi ne, %18, %c0_i32_14 : i32
    scf.if %19 {
      %c0_15 = arith.constant 0 : index
      %c0_16 = arith.constant 0 : index
      %20 = vector.load %arg8[%c0_15, %c0_16] : memref<16x128xf32, #tpu.memory_space<vmem>>, vector<16x128xf32>
      %c0_17 = arith.constant 0 : index
      %c0_18 = arith.constant 0 : index
      %21 = vector.load %arg6[%c0_17, %c0_18] : memref<1x128xf32, #tpu.memory_space<vmem>>, vector<1x128xf32>
      %22 = vector.broadcast %21 : vector<1x128xf32> to vector<16x128xf32>
      %23 = arith.addf %20, %22 : vector<16x128xf32>
      %c0_19 = arith.constant 0 : index
      %c0_20 = arith.constant 0 : index
      %24 = vector.load %arg7[%c0_19, %c0_20] : memref<16x128xf32, #tpu.memory_space<vmem>>, vector<16x128xf32>
      tpu.vector_store %arg7[%c0_19, %c0_20], %23 {strides = array<i32>} : memref<16x128xf32, #tpu.memory_space<vmem>>, vector<16x128xf32>,
    } else {
    }
    return
  }
  func.func @transform_0(%arg0: i32, %arg1: i32) -> (i32, i32) {
    %c0_i32 = arith.constant 0 : i32
    %c0_i32_0 = arith.constant 0 : i32
    return %arg0, %c0_i32 : i32, i32
  }
  func.func @transform_1(%arg0: i32, %arg1: i32) -> (i32, i32) {
    %c0_i32 = arith.constant 0 : i32
    %c0_i32_0 = arith.constant 0 : i32
    return %c0_i32, %arg1 : i32, i32
  }
  func.func @transform_2(%arg0: i32, %arg1: i32) -> (i32, i32) {
    %c0_i32 = arith.constant 0 : i32
    %c0_i32_0 = arith.constant 0 : i32
    return %c0_i32, %arg1 : i32, i32
  }
  func.func @transform_3(%arg0: i32, %arg1: i32) -> (i32, i32) {
    %c0_i32 = arith.constant 0 : i32
    %c0_i32_0 = arith.constant 0 : i32
    return %arg1, %c0_i32 : i32, i32
  }
  func.func @transform_4(%arg0: i32, %arg1: i32) -> (i32, i32) {
    %c0_i32 = arith.constant 0 : i32
    %c0_i32_0 = arith.constant 0 : i32
    %c0_i32_1 = arith.constant 0 : i32
    return %c0_i32, %c0_i32_0 : i32, i32
  }
  func.func @transform_5(%arg0: i32, %arg1: i32) -> (i32, i32) {
    %c0_i32 = arith.constant 0 : i32
    %c0_i32_0 = arith.constant 0 : i32
    return %arg0, %c0_i32 : i32, i32
  }
}

</mosaic_0001>

<bundles_post_ra>
// kernel: tpu_custom_call.1
= control target key start
LH: loop header
LB: loop body
LE: loop exit
PB: predicated region body
PF: predicated region fallthrough
CT: control target
= control target key end

     0   :  { %s1526_s0 = inlined_call_operand.hbm [shape: bf16[16,128], index: 0, kind: input, shape index: {}]   ;;  %s1527_s1 = inlined_call_operand.hbm [shape: bf16[128,1280], index: 1, kind: input, shape index: {}]   ;;  %s1528_s2 = inlined_call_operand.hbm [shape: f32[1,1280], index: 2, kind: input, shape index: {}]   ;;  %s1529_s3 = inlined_call_operand.hbm [shape: bf16[1280,128], index: 3, kind: input, shape index: {}]   ;;  %s1530_s4 = inlined_call_operand.vmem [shape: f32[1,128], index: 4, kind: input, shape index: {}]   ;;  %s1531_s5 = inlined_call_operand.hbm [shape: f32[16,128], index: 5, kind: output, shape index: {}]  }
   0x1   :  { %1535 = sst [smem:[#allocation16_spill]] %s1526_s0 }
   0x2   :  { %10 = vsyncpa [#allocation4], 0 }
   0x3   :  { %11 = vsyncpa [#allocation7], 0 }
   0x4   :  { %13 = vsyncpa [#allocation7 + $0x1], 0 }
   0x5   :  { %14 = vsyncpa [#allocation10], 0 }
   0x6   :  { %16 = vsyncpa [#allocation10 + $0x1], 0 }
   0x7   :  { %17 = vsyncpa [#allocation5], 0  ;;  %s1303_s18 = smov 0   ;;  %s1305_s19 = smov 0  }
   0x8   :  { %s1307_s20 = smov 0   ;;  %s1309_s21 = smov 0  }
   0x9   :  { %s1311_s22 = smov 0   ;;  %s1313_s23 = smov 0  }
   0xa LB: > { %s32_s24 = sadd.s32 1, %s1253_s22  ;;  %s68_s25 = sadd.s32 1, %s1245_s20  ;;  %s1257_s23 = sphi %s1313_s23, %s23_s23   ;;  %s1253_s22 = sphi %s1311_s22, %s1548_s22   ;;  %s1249_s21 = sphi %s1309_s21, %s1547_s21   ;;  %s1245_s20 = sphi %s1307_s20, %s1546_s20   ;;  %s1241_s19 = sphi %s1305_s19, %s1545_s19   ;;  %s1237_s18 = sphi %s1303_s18, %s1544_s18  }
   0xb   : > { %p33_p0 = scmp.ge.s32.totalorder %s32_s24, 5  ;;  %p75_p1 = scmp.ne.s32.totalorder %s1245_s20, %s1241_s19 }
   0xc   : > { %p76_p2 = scmp.eq.s32.totalorder %s1257_s23, 0  ;;  %p957_p4 = scmp.lt.s32.totalorder %s1257_s23, 5 }
   0xd   : > { %s1550_s24 = smov (%p33_p0, %s32_s24), 0  ;;  %s223_s27 = sand.u32 1, %s1257_s23  }
   0xe   : > { %p77_p3 = por %p76_p2, %p75_p1  ;;  %s65_s26 = ssub.s32 %s1253_s22, %s1550_s24 }
   0xf   : > { %p66_p5 = scmp.eq.s32.totalorder %s65_s26, 0  ;;  %s1345_s28 = sand.u32 1, %s1245_s20  }
  0x10   : > { %s903_s29 = sshll.u32 %s1253_s22, 7  ;;  %s1532_s6 = sshll.u32 %s1345_s28, 7 }
  0x11   : > { %s1349_s30 = scalar_select %p66_p5, %s1245_s20, %s68_s25  }
  0x12   : > { %s233_s9 = scalar_lea.hbm %s1527_s1, %s903_s29  ;;  %p1355_p6 = pnand %p957_p4, %p77_p3 }
  0x13   : > { %s227_s11 = scalar_lea.vmem [#allocation6], %s1532_s6  ;;  %s1361_s13 = scalar_lea.sflag [#allocation7], %s223_s27 }
  0x14   : > { %s234_s12 = sshll.u32 %s227_s11, 4  ;;  %p1063_p7 = pneg %p1355_p6  ;;  %s235_s12 = int_to_ptr.vmem [resolvable:$true] %s234_s12 }
  0x15   : > { %s1074_s14 = scalar_lea.vmem %s235_s12, 2048  ;;  %s1259_s15 = smov [#allocation6]  }
  0x16   : > { %p1075_p8 = scmp.ne.s32.totalorder %s235_s12, %s1074_s14  ;;  %s1079_s16 = sshll.u32 %s1259_s15, 4  ;;  %s1080_s16 = int_to_ptr.vmem [resolvable:$false] %s1079_s16 }
  0x17   : > { %s1081_s17 = scalar_lea.vmem %s1080_s16, 4096  ;;  %p1082_p11 = scmp.lt.s32.totalorder %s235_s12, %s1080_s16 }
  0x18   : > { %p1077_p9 = pnand %p1075_p8, %p1063_p7  ;;  %p1083_p12 = scmp.lt.s32.totalorder %s1081_s17, %s1074_s14 }
  0x1a   : > { %p1078_p10 = pneg %p1077_p9  ;;  %p1084_p13 = por %p1083_p12, %p1082_p11 }
  0x1c   : > { %p1085_p0 = pnand %p1084_p13, %p1078_p10 }
  0x1e   : > { %1088 = shalt.err (!%p1085_p0)
}
  0x1f   : > { %s1260_s25 = smov 640   ;;  %s1261_s26 = smov 128  }
  0x20   : > { %s1262_s27 = smov 8   ;;  %s1372_s29 = sadd.s32 4294967295, %s1257_s23  }
  0x21   : > { %949 = dma.hbm_to_vmem [thread:$0]  (!%p1355_p6), %s233_s9, 2048, %s235_s12, %s1361_s13, %s1260_s25, %s1261_s26, %s1262_s27  }
  0x22   : > { %p81_p1 = scmp.ne.s32.totalorder %s1241_s19, %s1237_s18  ;;  %p82_p2 = scmp.eq.s32.totalorder %s1372_s29, 0 }
  0x23   : > { %p846_p3 = scmp.ge.s32.totalorder %s1257_s23, 1  ;;  %p191_p4 = scmp.lt.s32.totalorder %s1257_s23, 6 }
  0x24   : > { %p1381_p5 = por %p82_p2, %p81_p1  ;;  %s1263_s9 = smov [#allocation3]  }
  0x25   : > { %p1385_p8 = pnand %p846_p3, %p191_p4  ;;  %s206_s11 = sshll.u32 %s1263_s9, 4  ;;  %s207_s11 = int_to_ptr.vmem [resolvable:$true] %s206_s11 }
  0x26   : > { %s852_s12 = sshll.u32 %s1345_s28, 1  ;;  %s904_s18 = sshll.u32 %s1253_s22, 5 }
  0x27   : > { %p942_p9 = pneg %p1385_p8  ;;  %s1402_s17 = scalar_lea.hbm %s1528_s2, %s904_s18 }
  0x28   : > { %s248_s25 = scalar_lea.vmem [#allocation8], %s852_s12  ;;  %s1100_s27 = scalar_lea.vmem %s207_s11, 128 }
  0x29   : > { %p1395_p10 = pnand %p942_p9, %p82_p2  ;;  %s256_s26 = sshll.u32 %s248_s25, 4  ;;  %s257_s26 = int_to_ptr.vmem [resolvable:$true] %s256_s26 }
  0x2a   : > { %p1101_p12 = scmp.ne.s32.totalorder %s207_s11, %s1100_s27  ;;  %p1108_p1 = scmp.lt.s32.totalorder %s207_s11, %s207_s11 }
  0x2b   : > { %p1091_p11 = pneg %p1395_p10  ;;  %p1109_p3 = scmp.lt.s32.totalorder %s1100_s27, %s1100_s27 }
  0x2d   : > { %p1103_p13 = pnand %p1101_p12, %p1091_p11  ;;  %p1110_p4 = por %p1109_p3, %p1108_p1 }
  0x2f   : > { %p1104_p0 = pneg %p1103_p13 }
  0x31   : > { %p1111_p9 = pnand %p1110_p4, %p1104_p0 }
  0x33   : > { %1114 = shalt.err (!%p1111_p9)
}
  0x34   : > { %s1533_s9 = smov 64   ;;  %s1534_s15 = smov 4  }
  0x35   : > { %s1540_s0 = sld [smem:[#allocation16_spill]]  ;;  %s1128_s16 = scalar_lea.vmem %s257_s26, 32 }
  0x36   : > { %p1129_p11 = scmp.ne.s32.totalorder %s257_s26, %s1128_s16  ;;  %s1266_s25 = smov [#allocation8]  }
  0x37   : > { %s1133_s27 = sshll.u32 %s1266_s25, 4  ;;  %s1134_s27 = int_to_ptr.vmem [resolvable:$false] %s1133_s27 }
  0x38   : > { %p1131_p12 = pnand %p1129_p11, %p1063_p7  ;;  %s1135_s6 = scalar_lea.vmem %s1134_s27, 64 }
  0x39   : > { %p1136_p0 = scmp.lt.s32.totalorder %s257_s26, %s1134_s27  ;;  %p1137_p1 = scmp.lt.s32.totalorder %s1135_s6, %s1128_s16 }
  0x3a   : > { %p1132_p13 = pneg %p1131_p12 }
  0x3b   : > { %945 = dma.hbm_to_vmem [thread:$0]  (!%p1395_p10), %s1540_s0, 128, %s207_s11, [#allocation4], %s1533_s9, %s1533_s9, %s1534_s15  }
  0x3c   : > { %p1138_p3 = por %p1137_p1, %p1136_p0 }
  0x3e   : > { %p1139_p4 = pnand %p1138_p3, %p1132_p13 }
  0x40   : > { %1142 = shalt.err (!%p1139_p4)
}
  0x41   : > { %952 = dma.hbm_to_vmem [thread:$0]  (!%p1355_p6), %s1402_s17, 32, %s257_s26, %s1361_s13  }
  0x42   : > { %s905_s11 = sshll.u32 %s1253_s22, 11  ;;  %s1541_s14 = sshll.u32 %s1345_s28, 7 }
  0x43   : > { %s267_s12 = scalar_lea.vmem [#allocation9], %s1541_s14  ;;  %s273_s6 = scalar_lea.hbm %s1529_s3, %s905_s11 }
  0x44   : > { %s274_s18 = sshll.u32 %s267_s12, 4  ;;  %s264_s16 = scalar_lea.sflag [#allocation10], %s1345_s28  ;;  %s275_s18 = int_to_ptr.vmem [resolvable:$true] %s274_s18 }
  0x45   : > { %s1156_s27 = scalar_lea.vmem %s275_s18, 2048  ;;  %s1267_s15 = smov [#allocation9]  }
  0x46   : > { %p1157_p10 = scmp.ne.s32.totalorder %s275_s18, %s1156_s27  ;;  %s1161_s0 = sshll.u32 %s1267_s15, 4  ;;  %s1162_s0 = int_to_ptr.vmem [resolvable:$false] %s1161_s0 }
  0x47   : > { %s1163_s13 = scalar_lea.vmem %s1162_s0, 4096  ;;  %p1164_p12 = scmp.lt.s32.totalorder %s275_s18, %s1162_s0 }
  0x48   : > { %p1159_p9 = pnand %p1157_p10, %p1063_p7  ;;  %p1165_p13 = scmp.lt.s32.totalorder %s1163_s13, %s1156_s27 }
  0x4a   : > { %p1160_p11 = pneg %p1159_p9  ;;  %p1166_p0 = por %p1165_p13, %p1164_p12 }
  0x4c   : > { %p1167_p1 = pnand %p1166_p0, %p1160_p11 }
  0x4e   : > { %1170 = shalt.err (!%p1167_p1)
}
  0x4f   : > { %s1542_s17 = smov 4   ;;  %s1543_s26 = smov 64  }
  0x50   : > { %955 = dma.hbm_to_vmem [thread:$0]  (!%p1355_p6), %s273_s6, 2048, %s275_s18, %s264_s16, %s1543_s26, %s1543_s26, %s1542_s17  }
  0x51   : > { %286 = sbr.rel (%p1385_p8) target bundleno = 572 (0x23c), region = 40 }
  0x56   : > { %1220 = dma.done.wait (%p82_p2), [#allocation4], 128  }
  0x57   : > { %1222 = vsyncadd (%p82_p2), [#allocation4], 4294967168  ;;  %s292_s0 = sand.u32 1, %s1372_s29   ;;  %s294_s28 = sand.u32 1, %s1241_s19  }
  0x58   : > { %s860_s9 = sshll.u32 %s294_s28, 7  ;;  %s293_s10 = scalar_lea.sflag [#allocation7], %s292_s0 }
  0x59   : > { %s1444_s15 = scalar_lea.vmem [#allocation6], %s860_s9 }
  0x5a   : > { %1224 = dma.done.wait (%p1381_p5), %s293_s10, 2080  }
  0x5b   : > { %1226 = vsyncadd (%p1381_p5), %s293_s10, 4294965216  ;;  %s861_s8 = sshll.u32 %s294_s28, 1  ;;  %s311_s14 = scalar_lea.sflag [#allocation10], %s294_s28 }
  0x5c   : > { %s1450_s11 = scalar_lea.vmem [#allocation8], %s861_s8  ;;  %s1452_s12 = scalar_lea.vmem [#allocation9], %s860_s9 }
  0x5d   : > { %1228 = dma.done.wait (%p1381_p5), %s311_s14, 2048  }
  0x5e   : > { %1230 = vsyncadd (%p1381_p5), %s311_s14, 4294965248  ;;  %p863_p6 = scmp.ne.s32.totalorder %s1249_s21, 0 }
  0x60   : > { %355 = sbr.rel (%p863_p6) target bundleno = 103 (0x67), region = 60 }
  0x65   : > { %v1268_v0 = vmov 0.0  }
  0x66   : > { %356 = vst [vmem:[#allocation2] sm:$0xff] %v1268_v0  ;;  %357 = vst [vmem:[#allocation2 + $0x8] sm:$0xff] %v1268_v0 }
  0x67 PF: > { %v1020_v1 = vld [vmem:[%s1444_s15 + $0x74] ss:$8 sps:$4 sm:$0xff]   ;;  %v1022_v2 = vld [vmem:[%s1444_s15 + $0x70] ss:$8 sps:$4 sm:$0xff]   ;;  %v1269_v3 = vmov 0   ;;  %v1051_v21 = vld [vmem:[%s1452_s12 + $0x60] sm:$0xff]   ;;  %v378_v35 = vlaneseq }
  0x68   : > { %506 = vmatprep.mubr.bf16.mxu0 %v1269_v3  ;;  %474 = vmatprep.subr.bf16.mxu0 %v1020_v1  ;;  %v1023_v4 = vld [vmem:[%s1444_s15 + $0x64] ss:$8 sps:$4 sm:$0xff]   ;;  %v1025_v5 = vld [vmem:[%s1444_s15 + $0x60] ss:$8 sps:$4 sm:$0xff]   ;;  %v1026_v6 = vld [vmem:[%s1444_s15 + $0x54] ss:$8 sps:$4 sm:$0xff]  }
  0x69   : > { %475 = vmatpush1.bf16.msra.mxu0 %v1022_v2  ;;  %v1028_v7 = vld [vmem:[%s1444_s15 + $0x50] ss:$8 sps:$4 sm:$0xff]   ;;  %v1029_v8 = vld [vmem:[%s1444_s15 + $0x44] ss:$8 sps:$4 sm:$0xff]   ;;  %v1031_v9 = vld [vmem:[%s1444_s15 + $0x40] ss:$8 sps:$4 sm:$0xff]  }
  0x6a   : > { %476 = vmatprep.subr.bf16.mxu0 %v1023_v4  ;;  %v1032_v10 = vld [vmem:[%s1444_s15 + $0x34] ss:$8 sps:$4 sm:$0xff]   ;;  %v1034_v12 = vld [vmem:[%s1444_s15 + $0x30] ss:$8 sps:$4 sm:$0xff]   ;;  %v1035_v14 = vld [vmem:[%s1444_s15 + $0x24] ss:$8 sps:$4 sm:$0xff]  }
  0x6b   : > { %v1045_v11 = vld [vmem:[%s1452_s12 + $0x78] sm:$0xff]   ;;  %v1047_v15 = vld [vmem:[%s1452_s12 + $0x70] sm:$0xff]   ;;  %v1049_v17 = vld [vmem:[%s1452_s12 + $0x68] sm:$0xff]   ;;  %v379_v36 = vshrl.u32 %v378_v35, 7  ;;  %p897_p7 = scmp.ne.s32.totalorder %s1249_s21, 4 }
  0x6c   : > { %v1046_v13 = vld [vmem:[%s1452_s12 + $0x38] sm:$0xff]   ;;  %906 = vmatprep.subr.bf16.mxu1 %v1045_v11  ;;  %v1048_v16 = vld [vmem:[%s1452_s12 + $0x30] sm:$0xff]   ;;  %v1050_v20 = vld [vmem:[%s1452_s12 + $0x28] sm:$0xff]  }
  0x6d   : > { %477 = vmatpush1.bf16.msra.mxu0 %v1025_v5  ;;  %907 = vmatpush3.bf16.msra.mxu1 %v1046_v13  ;;  %v1037_v18 = vld [vmem:[%s1444_s15 + $0x20] ss:$8 sps:$4 sm:$0xff]   ;;  %v1038_v19 = vld [vmem:[%s1444_s15 + $0x14] ss:$8 sps:$4 sm:$0xff]   ;;  %v1040_v22 = vld [vmem:[%s1444_s15 + $0x10] ss:$8 sps:$4 sm:$0xff]  }
  0x6e   : > { %478 = vmatprep.subr.bf16.mxu0 %v1026_v6  ;;  %908 = vmatprep.subr.bf16.mxu1 %v1047_v15  ;;  %v1052_v23 = vld [vmem:[%s1452_s12 + $0x20] sm:$0xff]   ;;  %v1053_v25 = vld [vmem:[%s1452_s12 + $0x58] sm:$0xff]   ;;  %v1055_v29 = vld [vmem:[%s1452_s12 + $0x50] sm:$0xff]   ;;  %v384_v37 = vsub.s32 1, %v379_v36  ;;  %v380_v38 = vsub.s32 0, %v379_v36 }
  0x6f   : > { %v1041_v24 = vld [vmem:[%s1444_s15 + $0x4] ss:$8 sps:$4 sm:$0xff]   ;;  %v1043_v26 = vld [vmem:[%s1444_s15] ss:$8 sps:$4 sm:$0xff]   ;;  %v1044_v28 = vld [vmem:[#allocation3] sm:$0xff]  }
  0x70   : > { %v1054_v27 = vld [vmem:[%s1452_s12 + $0x18] sm:$0xff]   ;;  %v1056_v30 = vld [vmem:[%s1452_s12 + $0x10] sm:$0xff]   ;;  %v1057_v31 = vld [vmem:[%s1452_s12 + $0x48] sm:$0xff]  }
  0x71   : > { %479 = vmatpush1.bf16.msra.mxu0 %v1028_v7  ;;  %909 = vmatpush3.bf16.msra.mxu1 %v1048_v16  ;;  %v1058_v32 = vld [vmem:[%s1452_s12 + $0x8] sm:$0xff]   ;;  %v1059_v33 = vld [vmem:[%s1452_s12 + $0x40] sm:$0xff]   ;;  %v376_v39 = vld [vmem:[%s1450_s11] sm:$0x3] }
  0x72   : > { %480 = vmatprep.subr.bf16.mxu0 %v1029_v8  ;;  %910 = vmatprep.subr.bf16.mxu1 %v1049_v17  ;;  %v1060_v34 = vld [vmem:[%s1452_s12] sm:$0xff]   ;;  %v385_v41 = vrot.slane %v376_v39, %v384_v37  ;;  %v381_v42 = vrot.slane %v376_v39, %v380_v38  ;;  %v522_v62 = vld [vmem:[#allocation2 + $0x8] sm:$0xff] }
  0x73   : > { %v521_v57 = vld [vmem:[#allocation2] sm:$0xff] }
  0x75   : > { %481 = vmatpush1.bf16.msra.mxu0 %v1031_v9  ;;  %911 = vmatpush3.bf16.msra.mxu1 %v1050_v20 }
  0x76   : > { %482 = vmatprep.subr.bf16.mxu0 %v1032_v10  ;;  %912 = vmatprep.subr.bf16.mxu1 %v1051_v21 }
  0x79   : > { %483 = vmatpush1.bf16.msra.mxu0 %v1034_v12  ;;  %913 = vmatpush3.bf16.msra.mxu1 %v1052_v23 }
  0x7a   : > { %484 = vmatprep.subr.bf16.mxu0 %v1035_v14  ;;  %914 = vmatprep.subr.bf16.mxu1 %v1053_v25 }
  0x7d   : > { %485 = vmatpush1.bf16.msra.mxu0 %v1037_v18  ;;  %915 = vmatpush3.bf16.msra.mxu1 %v1054_v27 }
  0x7e   : > { %486 = vmatprep.subr.bf16.mxu0 %v1038_v19  ;;  %916 = vmatprep.subr.bf16.mxu1 %v1055_v29 }
  0x81   : > { %487 = vmatpush1.bf16.msra.mxu0 %v1040_v22  ;;  %917 = vmatpush3.bf16.msra.mxu1 %v1056_v30 }
  0x82   : > { %488 = vmatprep.subr.bf16.mxu0 %v1041_v24  ;;  %918 = vmatprep.subr.bf16.mxu1 %v1057_v31 }
  0x85   : > { %489 = vmatpush1.bf16.msra.mxu0 %v1043_v26  ;;  %919 = vmatpush3.bf16.msra.mxu1 %v1058_v32 }
  0x86   : > { %920 = vmatprep.subr.bf16.mxu1 %v1059_v33 }
  0x88   : > { %507 = vmatmul.mubr.bf16.vlgmr.msra.gmra.mxu0 %v1044_v28 }
  0x89   : > { %921 = vmatpush3.bf16.msra.mxu1 %v1060_v34 }
 0x148   : > { %v508_v40 = vpop.f32.mrf.mxu0 }
 0x149   : > { %v509_v47 = vadd.f32 %v508_v40, %v381_v42 }
 0x14a   : > { %v510_v43 = vpop.f32.mrf.mxu0 }
 0x14b   : > { %v511_v45 = vadd.f32 %v510_v43, %v385_v41  ;;  %v517_v53 = vmax.f32 %v509_v47, 0.0 }
 0x14c   : > { %v512_v44 = vpop.f32.mrf.mxu0 }
 0x14d   : > { %v513_v46 = vadd.f32 %v512_v44, %v381_v42  ;;  %v518_v51 = vmax.f32 %v511_v45, 0.0 }
 0x14e   : > { %v514_v48 = vpop.f32.mrf.mxu0 }
 0x14f   : > { %v515_v49 = vadd.f32 %v514_v48, %v385_v41  ;;  %v519_v50 = vmax.f32 %v513_v46, 0.0 }
 0x151   : > { %v520_v52 = vmax.f32 %v515_v49, 0.0  ;;  %v523_v55 = vpack.c.bf16 %v519_v50, %v517_v53 }
 0x153   : > { %v524_v54 = vpack.c.bf16 %v520_v52, %v518_v51 }
 0x155   : > { %685 = vmatprep.mubr.bf16.mxu1 %v524_v54 }
 0x156   : > { %686 = vmatmul.mubr.bf16.vlgmr.msra.gmra.mxu1 %v523_v55 }
 0x216   : > { %v922_v56 = vpop.f32.mrf.mxu1 }
 0x218   : > { %v923_v58 = vpop.f32.mrf.mxu1 }
 0x219   : > { %v924_v59 = vadd.f32 %v923_v58, %v922_v56 }
 0x21a   : > { %v925_v60 = vpop.f32.mrf.mxu1 }
 0x21b   : > { %v694_v61 = vadd.f32 %v924_v59, %v521_v57 }
 0x21c   : > { %v926_v63 = vpop.f32.mrf.mxu1 }
 0x21d   : > { %696 = vst [vmem:[#allocation2] sm:$0xff] %v694_v61  ;;  %v927_v0 = vadd.f32 %v926_v63, %v925_v60  ;;  %701 = sbr.rel (%p897_p7) target bundleno = 556 (0x22c), region = 64 }
 0x21f   : > { %v695_v1 = vadd.f32 %v927_v0, %v522_v62 }
 0x221   : > { %697 = vst [vmem:[#allocation2 + $0x8] sm:$0xff] %v695_v1 }
 0x222   : > { %v898_v3 = vld [vmem:[%s1530_s4] ss:$0 sm:$0xff] }
 0x224   : > { %v702_v2 = vld [vmem:[#allocation2] sm:$0xff] }
 0x225   : > { %v711_v5 = vadd.f32 %v898_v3, %v702_v2 }
 0x227   : > { %713 = vst [vmem:[#allocation11] sm:$0xff] %v711_v5 }
 0x228   : > { %v703_v4 = vld [vmem:[#allocation2 + $0x8] sm:$0xff] }
 0x229   : > { %v712_v6 = vadd.f32 %v898_v3, %v703_v4 }
 0x22b   : > { %714 = vst [vmem:[#allocation11 + $0x8] sm:$0xff] %v712_v6 }
 0x22c PF: > { %p959_p2 = scmp.eq.s32.totalorder %s1372_s29, 4  ;;  %s1270_s25 = smov [#allocation11]  }
 0x22d   : > { %s724_s6 = sshll.u32 %s1270_s25, 4  ;;  %s725_s6 = int_to_ptr.vmem [resolvable:$true] %s724_s6 }
 0x22e   : > { %s1171_s16 = scalar_lea.vmem %s725_s6, 256  ;;  %p1178_p4 = scmp.lt.s32.totalorder %s725_s6, %s725_s6 }
 0x22f   : > { %p1172_p5 = scmp.ne.s32.totalorder %s725_s6, %s1171_s16  ;;  %p1179_p10 = scmp.lt.s32.totalorder %s1171_s16, %s1171_s16 }
 0x231   : > { %p1173_p8 = pnand %p1172_p5, %p959_p2  ;;  %p1180_p9 = por %p1179_p10, %p1178_p4 }
 0x233   : > { %p1174_p3 = pneg %p1173_p8 }
 0x235   : > { %p1181_p11 = pnand %p1180_p9, %p1174_p3 }
 0x237   : > { %1184 = shalt.err (!%p1181_p11)
}
 0x238   : > { %s1271_s21 = smov 128   ;;  %s1272_s27 = smov 8  }
 0x239   : > { %939 = dma.vmem_to_hbm [thread:$0]  (%p959_p2), %s725_s6, 256, %s1531_s5, [#allocation5], %s1271_s21, %s1271_s21, %s1272_s27  }
 0x23a   : > { %1232 = dma.done.wait (%p959_p2), [#allocation5], 256  }
 0x23b   : > { %1234 = vsyncadd (%p959_p2), [#allocation5], 4294967040 }
 0x23c PF: > { %s23_s23 = sadd.s32 1, %s1257_s23   ;;  %s1544_s18 = smov %s1241_s19 }
 0x23d   : > { %p20_p12 = scmp.ge.s32.totalorder %s23_s23, 7   ;;  %s1545_s19 = smov %s1245_s20 }
 0x23e   : > { %s1546_s20 = smov %s1349_s30  ;;  %s1547_s21 = smov %s1253_s22 }
 0x23f   : > { %s1548_s22 = smov %s1550_s24  ;;  %22 = sbr.rel (!%p20_p12) target bundleno = 10 (0xa), region = 116 }
 0x244   :  { %740 = vsyncpa [#allocation4], 1 }
 0x245   :  { %742 = vsyncpa [#allocation4 + $0x1], 1 }
 0x246   :  { %743 = vsyncpa [#allocation7], 1 }
 0x247   :  { %745 = vsyncpa [#allocation7 + $0x1], 1 }
 0x248   :  { %746 = vsyncpa [#allocation10], 1 }
 0x249   :  { %748 = vsyncpa [#allocation10 + $0x1], 1 }
 0x24a   :  { %749 = vsyncpa [#allocation5], 1 }
 0x24b   :  { %751 = vsyncpa [#allocation5 + $0x1], 1 }

</bundles_post_ra>
